<compile_context>
chip_gen: v6e
topology: v6e:2x2x1
jax: 0.10.0
libtpu: 0.0.40
codegen_flags: <defaults>
</compile_context>

<pallas_src>
import functools

import jax
import jax.numpy as jnp
from jax.experimental import pallas as pl
from jax.experimental.pallas import tpu as pltpu


def _round_up(v: int, m: int) -> int:
    return ((v + m - 1) // m) * m


def _has_bf16_valu() -> bool:
    """True on chips whose VPU handles bf16 natively (v6e / v7x)."""
    try:
        kind = jax.devices()[0].device_kind.lower()
    except Exception:
        return False
    return any(tag in kind for tag in ("v6", "v7", "7x"))


def _choose_group(C: int, R: int) -> int:
    """Rows packed side-by-side per lane-row.

    Prefers the smallest G > 1 that makes G*C a multiple of 128 (lane-dense
    output, unmasked vst) while keeping G*C <= 384 (bounds the per-element MXU
    work of the segmented reduction).  If the row count R is not divisible by
    that G, falls back to the largest G <= 128//C that divides R (partial
    packing still beats a C-lane-wide plain path).  Returns 1 otherwise.
    """
    if C % 128 == 0 or C > 384:
        return 1
    G = 2
    while G * C <= 384:
        if (G * C) % 128 == 0 and R % G == 0:
            return G
        G += 1
    if C < 128:
        for G in range(128 // C, 1, -1):
            if R % G == 0:
                return G
    return 1


def _affine_tail(d, inv, w_ref, b_ref, o_ref, affine_dtype):
    """y = d * inv * w + b, optionally running the scale/shift in bf16."""
    if affine_dtype == jnp.float32:
        w = w_ref[...].astype(jnp.float32)
        b = b_ref[...].astype(jnp.float32)
        o_ref[...] = (d * (inv * w) + b).astype(o_ref.dtype)
    else:
        nrm = (d * inv).astype(affine_dtype)
        o_ref[...] = (nrm * w_ref[...].astype(affine_dtype)
                      + b_ref[...].astype(affine_dtype)).astype(o_ref.dtype)


def _layernorm_kernel(x_ref, w_ref, b_ref, o_ref, *, eps, affine_dtype):
    """Plain path: statistics over the full lane axis (width == C)."""
    x = x_ref[...].astype(jnp.float32)                      # (tm, C)
    mu = jnp.mean(x, axis=-1, keepdims=True)
    d = x - mu
    var = jnp.mean(d * d, axis=-1, keepdims=True)           # unbiased=False
    inv = jax.lax.rsqrt(var + eps)
    _affine_tail(d, inv, w_ref, b_ref, o_ref, affine_dtype)


def _layernorm_packed_kernel(x_ref, w_ref, b_ref, m_ref, o_ref, *,
                             eps, affine_dtype):
    """Lane-dense path: lane axis holds G groups of C channels.

    m_ref is a (GC, GC) block-diagonal matrix whose diagonal blocks are
    full((C, C), 1/C): x @ M gives, in every lane, the *mean* over that lane's
    C-wide group already broadcast back across the group — computed on the
    otherwise-idle MXU (the 1/C scale rides the MXU accumulate for free).
    """
    x = x_ref[...].astype(jnp.float32)                       # (tm, GC)
    M = m_ref[...]                                           # (GC, GC) f32
    mu = jnp.dot(x, M, preferred_element_type=jnp.float32)
    d = x - mu
    var = jnp.dot(d * d, M, preferred_element_type=jnp.float32)
    inv = jax.lax.rsqrt(var + eps)
    _affine_tail(d, inv, w_ref, b_ref, o_ref, affine_dtype)


def with_bias_layernorm(x, weight, bias, *, eps: float = 1e-5,
                        target_block_bytes: int = 4 << 20):
    """Apply WithBias_LayerNorm over the last axis of x (any leading dims)."""
    orig_shape = x.shape
    C = int(orig_shape[-1])
    assert weight.shape == (C,) and bias.shape == (C,)

    itemsize = jnp.dtype(x.dtype).itemsize
    row_mult = max(8, 32 // itemsize)        # sublane packing: 8 (f32) / 16 (bf16)

    x2d = x.reshape(-1, C)
    R = x2d.shape[0]

    # Lane-dense packing: put G rows side by side so the slab's last dim is a
    # (near-)full multiple of 128 lanes.
    G = _choose_group(C, R)
    GC = G * C
    Rp = R // G
    xp = x2d.reshape(Rp, GC)                 # free, row-major-consistent reshape

    wp = jnp.tile(weight.reshape(1, C), (1, G))
    bp = jnp.tile(bias.reshape(1, C), (1, G))

    # Statistics are always f32; the affine tail may run in bf16 on chips with
    # bf16 VALUs (v6e/v7x) to halve VALU work for bf16 data.
    affine_dtype = (jnp.bfloat16
                    if (x.dtype == jnp.bfloat16 and _has_bf16_valu())
                    else jnp.float32)

    # Row tile from a ~4 MiB byte budget.  With input+output double-buffered
    # the working set is ~4x the block (~16 MiB) plus small constants, which
    # fits the 32 MiB scoped-VMEM limit on every generation (v7x: 64 MiB
    # physical per TensorCore, so plenty of headroom).
    block_bytes = min(int(target_block_bytes), 6 << 20)
    row_bytes = max(1, GC * itemsize)
    tm = (block_bytes // row_bytes) // row_mult * row_mult
    tm = max(row_mult, tm)
    rows_ceil = _round_up(Rp, row_mult)
    tm = min(tm, rows_ceil)
    # Keep >= ~4 grid steps when there is enough work, so the "parallel" grid
    # axis can be sharded across v7x's two TensorCores (harmless on 1-TC
    # chips; also keeps the DMA/compute pipeline busy).
    min_steps = 4
    if Rp >= 2 * min_steps * row_mult:
        tm = min(tm, _round_up(-(-Rp // min_steps), row_mult))

    grid = (pl.cdiv(Rp, tm),)                # ragged last block handled by Pallas

    if G > 1:
        # Block-diagonal mean matrix with 1/C folded in (rides the MXU).
        seg = jnp.kron(jnp.eye(G, dtype=jnp.float32),
                       jnp.full((C, C), 1.0 / C, dtype=jnp.float32))   # (GC, GC)
        kernel = functools.partial(_layernorm_packed_kernel, eps=eps,
                                   affine_dtype=affine_dtype)
        in_specs = [
            pl.BlockSpec((tm, GC), lambda i: (i, 0)),    # x rows tile
            pl.BlockSpec((1, GC), lambda i: (0, 0)),     # tiled weight
            pl.BlockSpec((1, GC), lambda i: (0, 0)),     # tiled bias
            pl.BlockSpec((GC, GC), lambda i: (0, 0)),    # segment/mean matrix
        ]
        operands = (xp, wp, bp, seg)
    else:
        kernel = functools.partial(_layernorm_kernel, eps=eps,
                                   affine_dtype=affine_dtype)
        in_specs = [
            pl.BlockSpec((tm, GC), lambda i: (i, 0)),    # x rows tile
            pl.BlockSpec((1, GC), lambda i: (0, 0)),     # weight
            pl.BlockSpec((1, GC), lambda i: (0, 0)),     # bias
        ]
        operands = (xp, wp, bp)

    out = pl.pallas_call(
        kernel,
        out_shape=jax.ShapeDtypeStruct((Rp, GC), x.dtype),
        grid_spec=pltpu.PrefetchScalarGridSpec(
            num_scalar_prefetch=0,
            grid=grid,
            in_specs=in_specs,
            out_specs=pl.BlockSpec((tm, GC), lambda i: (i, 0)),
        ),
        compiler_params=pltpu.CompilerParams(
            dimension_semantics=("parallel",),
            vmem_limit_bytes=32 * 1024 * 1024,
        ),
    )(*operands)

    return out.reshape(orig_shape)


def _reference_layernorm(x, weight, bias, eps=1e-5):
    xf = x.astype(jnp.float32)
    mu = jnp.mean(xf, axis=-1, keepdims=True)
    var = jnp.mean((xf - mu) ** 2, axis=-1, keepdims=True)
    y = (xf - mu) / jnp.sqrt(var + eps) * weight.astype(jnp.float32) \
        + bias.astype(jnp.float32)
    return y.astype(x.dtype)


if __name__ == "__main__":
    key = jax.random.PRNGKey(0)

    # Test 1: module-consistent small shape (B=2, S=8, hidden=32) — lane-dense
    # packed path (C=32 -> G=4, GC=128) with default init params (ones/zeros).
    B, S, C = 2, 8, 32
    x = jax.random.normal(key, (B, S, C), dtype=jnp.float32)
    weight = jnp.ones((C,), dtype=jnp.float32)
    bias = jnp.zeros((C,), dtype=jnp.float32)
    out = jax.block_until_ready(with_bias_layernorm(x, weight, bias))
    ref = _reference_layernorm(x, weight, bias)
    assert out.shape == x.shape
    assert jnp.allclose(out, ref, atol=1e-5, rtol=1e-5), "packed path mismatch"

    # Test 2: plain path (C=160 not packable under the GC<=384 cap), ragged
    # row count, non-trivial affine.
    k2, k3, k4 = jax.random.split(jax.random.PRNGKey(0), 3)
    x2 = jax.random.normal(k2, (2, 7, 160), dtype=jnp.float32)
    w2 = jax.random.normal(k3, (160,), dtype=jnp.float32)
    b2 = jax.random.normal(k4, (160,), dtype=jnp.float32)
    out2 = jax.block_until_ready(with_bias_layernorm(x2, w2, b2))
    ref2 = _reference_layernorm(x2, w2, b2)
    assert jnp.allclose(out2, ref2, atol=1e-4, rtol=1e-4), "plain path mismatch"

    # Test 3: packed path with *random* weight/bias (locks the lane layout in).
    k5, k6, k7 = jax.random.split(jax.random.PRNGKey(1), 3)
    x3 = jax.random.normal(k5, (B, S, C), dtype=jnp.float32)
    w3 = jax.random.normal(k6, (C,), dtype=jnp.float32)
    b3 = jax.random.normal(k7, (C,), dtype=jnp.float32)
    out3 = jax.block_until_ready(with_bias_layernorm(x3, w3, b3))
    ref3 = _reference_layernorm(x3, w3, b3)
    assert jnp.allclose(out3, ref3, atol=1e-4, rtol=1e-4), "packed affine mismatch"

    # Test 4: generalized packing, C=48 -> G=8, GC=384.
    k8, k9, k10 = jax.random.split(jax.random.PRNGKey(2), 3)
    x4 = jax.random.normal(k8, (2, 8, 48), dtype=jnp.float32)
    w4 = jax.random.normal(k9, (48,), dtype=jnp.float32)
    b4 = jax.random.normal(k10, (48,), dtype=jnp.float32)
    out4 = jax.block_until_ready(with_bias_layernorm(x4, w4, b4))
    ref4 = _reference_layernorm(x4, w4, b4)
    assert jnp.allclose(out4, ref4, atol=1e-4, rtol=1e-4), "GC=384 packed mismatch"

    # Test 5: partial packing fallback (C=32, R=14 not divisible by 4 -> G=2).
    k11, k12, k13 = jax.random.split(jax.random.PRNGKey(3), 3)
    x5 = jax.random.normal(k11, (2, 7, 32), dtype=jnp.float32)
    w5 = jax.random.normal(k12, (32,), dtype=jnp.float32)
    b5 = jax.random.normal(k13, (32,), dtype=jnp.float32)
    out5 = jax.block_until_ready(with_bias_layernorm(x5, w5, b5))
    ref5 = _reference_layernorm(x5, w5, b5)
    assert jnp.allclose(out5, ref5, atol=1e-4, rtol=1e-4), "partial packing mismatch"

    # Test 6: bf16 smoke test (exercises the optional bf16 affine tail on
    # v6e/v7x; falls back to f32 tail elsewhere).  Loose tolerance for bf16.
    x6 = jax.random.normal(k5, (B, S, C), dtype=jnp.float32).astype(jnp.bfloat16)
    w6 = w3.astype(jnp.bfloat16)
    b6 = b3.astype(jnp.bfloat16)
    out6 = jax.block_until_ready(with_bias_layernorm(x6, w6, b6))
    ref6 = _reference_layernorm(x6, w6, b6)
    assert jnp.allclose(out6.astype(jnp.float32), ref6.astype(jnp.float32),
                        atol=1e-1, rtol=1e-1), "bf16 path mismatch"

    print("KERNEL_OK")
</pallas_src>

<mosaic_0001>
module attributes {stable_mosaic.version = 11 : i64} {
  func.func @_layernorm_packed_kernel(%arg0: i32, %arg1: memref<8x128xf32, #tpu.memory_space<vmem>>, %arg2: memref<1x128xf32, #tpu.memory_space<vmem>>, %arg3: memref<1x128xf32, #tpu.memory_space<vmem>>, %arg4: memref<128x128xf32, #tpu.memory_space<vmem>>, %arg5: memref<8x128xf32, #tpu.memory_space<vmem>>) attributes {dimension_semantics = [#tpu.dimension_semantics<parallel>], iteration_bounds = array<i64: 1>, scalar_prefetch = 0 : i64, scratch_operands = 0 : i64, tpu.core_type = #tpu.core_type<tc>, window_params = [{transform_indices = @transform_0, window_bounds = array<i64: 8, 128>}, {pipeline_mode = #tpu.pipeline_mode<synchronous>, transform_indices = @transform_1, window_bounds = array<i64: 1, 128>}, {pipeline_mode = #tpu.pipeline_mode<synchronous>, transform_indices = @transform_2, window_bounds = array<i64: 1, 128>}, {pipeline_mode = #tpu.pipeline_mode<synchronous>, transform_indices = @transform_3, window_bounds = array<i64: 128, 128>}, {transform_indices = @transform_4, window_bounds = array<i64: 8, 128>}]} {
    %c0 = arith.constant 0 : index
    %c0_0 = arith.constant 0 : index
    %0 = vector.load %arg1[%c0, %c0_0] : memref<8x128xf32, #tpu.memory_space<vmem>>, vector<8x128xf32>
    %c0_1 = arith.constant 0 : index
    %c0_2 = arith.constant 0 : index
    %1 = vector.load %arg4[%c0_1, %c0_2] : memref<128x128xf32, #tpu.memory_space<vmem>>, vector<128x128xf32>
    %cst = arith.constant dense<0.000000e+00> : vector<8x128xf32>
    %2 = tpu.matmul %0, %1, %cst {dimension_numbers = #tpu.dot_dimension_numbers<[1], [0], [0], [1], [0, 0, 1, 1], [], []>} : vector<8x128xf32>, vector<128x128xf32>, vector<8x128xf32> -> vector<8x128xf32>
    %3 = arith.subf %0, %2 : vector<8x128xf32>
    %4 = arith.mulf %3, %3 : vector<8x128xf32>
    %cst_3 = arith.constant dense<0.000000e+00> : vector<8x128xf32>
    %5 = tpu.matmul %4, %1, %cst_3 {dimension_numbers = #tpu.dot_dimension_numbers<[1], [0], [0], [1], [0, 0, 1, 1], [], []>} : vector<8x128xf32>, vector<128x128xf32>, vector<8x128xf32> -> vector<8x128xf32>
    %cst_4 = arith.constant 9.99999974E-6 : f32
    %6 = vector.broadcast %cst_4 : f32 to vector<8x128xf32>
    %7 = arith.addf %5, %6 : vector<8x128xf32>
    %8 = math.rsqrt %7 : vector<8x128xf32>
    %c0_5 = arith.constant 0 : index
    %c0_6 = arith.constant 0 : index
    %9 = vector.load %arg2[%c0_5, %c0_6] : memref<1x128xf32, #tpu.memory_space<vmem>>, vector<1x128xf32>
    %c0_7 = arith.constant 0 : index
    %c0_8 = arith.constant 0 : index
    %10 = vector.load %arg3[%c0_7, %c0_8] : memref<1x128xf32, #tpu.memory_space<vmem>>, vector<1x128xf32>
    %11 = vector.broadcast %9 : vector<1x128xf32> to vector<8x128xf32>
    %12 = arith.mulf %8, %11 : vector<8x128xf32>
    %13 = arith.mulf %3, %12 : vector<8x128xf32>
    %14 = vector.broadcast %10 : vector<1x128xf32> to vector<8x128xf32>
    %15 = arith.addf %13, %14 : vector<8x128xf32>
    %c0_9 = arith.constant 0 : index
    %c0_10 = arith.constant 0 : index
    %16 = vector.load %arg5[%c0_9, %c0_10] : memref<8x128xf32, #tpu.memory_space<vmem>>, vector<8x128xf32>
    tpu.vector_store %arg5[%c0_9, %c0_10], %15 {strides = array<i32>} : memref<8x128xf32, #tpu.memory_space<vmem>>, vector<8x128xf32>,
    return
  }
  func.func @transform_0(%arg0: i32) -> (i32, i32) {
    %c0_i32 = arith.constant 0 : i32
    %c0_i32_0 = arith.constant 0 : i32
    return %arg0, %c0_i32 : i32, i32
  }
  func.func @transform_1(%arg0: i32) -> (i32, i32) {
    %c0_i32 = arith.constant 0 : i32
    %c0_i32_0 = arith.constant 0 : i32
    %c0_i32_1 = arith.constant 0 : i32
    return %c0_i32, %c0_i32_0 : i32, i32
  }
  func.func @transform_2(%arg0: i32) -> (i32, i32) {
    %c0_i32 = arith.constant 0 : i32
    %c0_i32_0 = arith.constant 0 : i32
    %c0_i32_1 = arith.constant 0 : i32
    return %c0_i32, %c0_i32_0 : i32, i32
  }
  func.func @transform_3(%arg0: i32) -> (i32, i32) {
    %c0_i32 = arith.constant 0 : i32
    %c0_i32_0 = arith.constant 0 : i32
    %c0_i32_1 = arith.constant 0 : i32
    return %c0_i32, %c0_i32_0 : i32, i32
  }
  func.func @transform_4(%arg0: i32) -> (i32, i32) {
    %c0_i32 = arith.constant 0 : i32
    %c0_i32_0 = arith.constant 0 : i32
    return %arg0, %c0_i32 : i32, i32
  }
}

</mosaic_0001>

<bundles_post_ra>
// kernel: tpu_custom_call.1
= control target key start
LH: loop header
LB: loop body
LE: loop exit
PB: predicated region body
PF: predicated region fallthrough
CT: control target
= control target key end

     0   :  { %9 = vsyncpa [#allocation3], 0  ;;  %s514_s0 = inlined_call_operand.hbm [shape: f32[4,128], index: 0, kind: input, shape index: {}]   ;;  %s515_s1 = inlined_call_operand.vmem [shape: f32[1,128], index: 1, kind: input, shape index: {}]   ;;  %s516_s2 = inlined_call_operand.vmem [shape: f32[1,128], index: 2, kind: input, shape index: {}]   ;;  %s517_s3 = inlined_call_operand.hbm [shape: f32[128,128], index: 3, kind: input, shape index: {}]   ;;  %s518_s4 = inlined_call_operand.hbm [shape: f32[4,128], index: 4, kind: output, shape index: {}]  }
   0x1   :  { %10 = vsyncpa [#allocation6], 0 }
   0x2   :  { %11 = vsyncpa [#allocation4], 0 }
   0x3   :  { %16 = vsyncadd [#allocation3], 64  ;;  %s425_s15 = smov [#allocation2]  }
   0x4   :  { %s17_s16 = sshll.u32 %s425_s15, 4  ;;  %s18_s16 = int_to_ptr.vmem [resolvable:$true] %s17_s16 }
   0x5   :  { %s367_s17 = scalar_lea.vmem %s18_s16, 64  ;;  %s371_s18 = scalar_lea.vmem %s18_s16, 128 }
   0x6   :  { %p368_p0 = scmp.ne.s32.totalorder %s18_s16, %s367_s17  ;;  %p372_p1 = scmp.lt.s32.totalorder %s18_s16, %s18_s16 }
   0x7   :  { %p373_p2 = scmp.lt.s32.totalorder %s371_s18, %s367_s17 }
   0x9   :  { %p374_p3 = por %p373_p2, %p372_p1 }
   0xb   :  { %p375_p4 = pnand %p374_p3, %p368_p0 }
   0xd   :  { %378 = shalt.err (!%p375_p4)
}
   0xe   :  { %s426_s19 = smov 64   ;;  %s427_s20 = smov 4  }
   0xf   :  { %23 = dma.hbm_to_vmem [thread:$0]  %s514_s0, 64, %s18_s16, [#allocation3], %s426_s19, %s426_s19, %s427_s20  }
  0x10   :  { %s428_s23 = smov [#allocation5]  }
  0x11   :  { %s33_s24 = sshll.u32 %s428_s23, 4  ;;  %s34_s24 = int_to_ptr.vmem [resolvable:$true] %s33_s24 }
  0x12   :  { %s387_s25 = scalar_lea.vmem %s34_s24, 2048  ;;  %p392_p6 = scmp.lt.s32.totalorder %s34_s24, %s34_s24 }
  0x13   :  { %p388_p5 = scmp.ne.s32.totalorder %s34_s24, %s387_s25  ;;  %p393_p7 = scmp.lt.s32.totalorder %s387_s25, %s387_s25 }
  0x15   :  { %p394_p8 = por %p393_p7, %p392_p6 }
  0x17   :  { %p395_p9 = pnand %p394_p8, %p388_p5 }
  0x19   :  { %398 = shalt.err (!%p395_p9)
}
  0x1a   :  { %s429_s26 = smov 128   ;;  %s430_s27 = smov 8  }
  0x1b   :  { %39 = dma.hbm_to_vmem [thread:$0]  %s517_s3, 2048, %s34_s24, [#allocation6], %s429_s26, %s429_s26, %s430_s27  }
  0x1c   :  { %419 = dma.done.wait [#allocation3], 128  }
  0x1d   :  { %420 = vsyncadd [#allocation3], 4294967168 }
  0x1e   :  { %421 = dma.done.wait [#allocation6], 2048  }
  0x1f   :  { %422 = vsyncadd [#allocation6], 4294965248  ;;  %v431_v0 = vmov 0.0   ;;  %vm432_vm0 = vmmov 0   ;;  %v62_v1 = vld [vmem:[#allocation5 + $0x78] sm:$0xff]  ;;  %v61_v2 = vld [vmem:[#allocation5 + $0x70] sm:$0xff] }
  0x20   :  { %278 = vmatprep.subr.mxu0 %v431_v0  ;;  %310 = vmatprep.mubr.msk.f32.mxu0 %vm432_vm0, %v431_v0  ;;  %v60_v3 = vld [vmem:[#allocation5 + $0x68] sm:$0xff]  ;;  %v59_v4 = vld [vmem:[#allocation5 + $0x60] sm:$0xff]  ;;  %v58_v5 = vld [vmem:[#allocation5 + $0x58] sm:$0xff] }
  0x21   :  { %313 = vmatprep.subr.mxu1 %v431_v0  ;;  %345 = vmatprep.mubr.msk.f32.mxu1 %vm432_vm0, %v431_v0  ;;  %v57_v6 = vld [vmem:[#allocation5 + $0x50] sm:$0xff]  ;;  %v56_v7 = vld [vmem:[#allocation5 + $0x48] sm:$0xff]  ;;  %v55_v8 = vld [vmem:[#allocation5 + $0x40] sm:$0xff] }
  0x22   :  { %279 = vmatpush3.msra.mxu0 %v62_v1  ;;  %314 = vmatpush3.msra.mxu1 %v62_v1  ;;  %v54_v9 = vld [vmem:[#allocation5 + $0x38] sm:$0xff]  ;;  %v53_v10 = vld [vmem:[#allocation5 + $0x30] sm:$0xff]  ;;  %v52_v11 = vld [vmem:[#allocation5 + $0x28] sm:$0xff] }
  0x23   :  { %280 = vmatprep.subr.mxu0 %v431_v0  ;;  %315 = vmatprep.subr.mxu1 %v431_v0  ;;  %v51_v12 = vld [vmem:[#allocation5 + $0x20] sm:$0xff]  ;;  %v50_v13 = vld [vmem:[#allocation5 + $0x18] sm:$0xff]  ;;  %v49_v14 = vld [vmem:[#allocation5 + $0x10] sm:$0xff] }
  0x24   :  { %281 = vmatpush3.msra.mxu0 %v61_v2  ;;  %316 = vmatpush3.msra.mxu1 %v61_v2  ;;  %v48_v15 = vld [vmem:[#allocation5 + $0x8] sm:$0xff]  ;;  %v47_v16 = vld [vmem:[#allocation5] sm:$0xff]  ;;  %v46_v17 = vld [vmem:[#allocation2] sm:$0xff] }
  0x25   :  { %282 = vmatprep.subr.mxu0 %v431_v0  ;;  %317 = vmatprep.subr.mxu1 %v431_v0  ;;  %v242_v25 = vld [vmem:[%s515_s1] ss:$0 sm:$0xff] }
  0x26   :  { %283 = vmatpush3.msra.mxu0 %v60_v3  ;;  %318 = vmatpush3.msra.mxu1 %v60_v3  ;;  %v243_v28 = vld [vmem:[%s516_s2] ss:$0 sm:$0xff] }
  0x27   :  { %284 = vmatprep.subr.mxu0 %v431_v0  ;;  %319 = vmatprep.subr.mxu1 %v431_v0 }
  0x28   :  { %285 = vmatpush3.msra.mxu0 %v59_v4  ;;  %320 = vmatpush3.msra.mxu1 %v59_v4 }
  0x29   :  { %286 = vmatprep.subr.mxu0 %v431_v0  ;;  %321 = vmatprep.subr.mxu1 %v431_v0 }
  0x2a   :  { %287 = vmatpush3.msra.mxu0 %v58_v5  ;;  %322 = vmatpush3.msra.mxu1 %v58_v5 }
  0x2b   :  { %288 = vmatprep.subr.mxu0 %v431_v0  ;;  %323 = vmatprep.subr.mxu1 %v431_v0 }
  0x2c   :  { %289 = vmatpush3.msra.mxu0 %v57_v6  ;;  %324 = vmatpush3.msra.mxu1 %v57_v6 }
  0x2d   :  { %290 = vmatprep.subr.mxu0 %v431_v0  ;;  %325 = vmatprep.subr.mxu1 %v431_v0 }
  0x2e   :  { %291 = vmatpush3.msra.mxu0 %v56_v7  ;;  %326 = vmatpush3.msra.mxu1 %v56_v7 }
  0x2f   :  { %292 = vmatprep.subr.mxu0 %v431_v0  ;;  %327 = vmatprep.subr.mxu1 %v431_v0 }
  0x30   :  { %293 = vmatpush3.msra.mxu0 %v55_v8  ;;  %328 = vmatpush3.msra.mxu1 %v55_v8 }
  0x31   :  { %294 = vmatprep.subr.mxu0 %v431_v0  ;;  %329 = vmatprep.subr.mxu1 %v431_v0 }
  0x32   :  { %295 = vmatpush3.msra.mxu0 %v54_v9  ;;  %330 = vmatpush3.msra.mxu1 %v54_v9 }
  0x33   :  { %296 = vmatprep.subr.mxu0 %v431_v0  ;;  %331 = vmatprep.subr.mxu1 %v431_v0 }
  0x34   :  { %297 = vmatpush3.msra.mxu0 %v53_v10  ;;  %332 = vmatpush3.msra.mxu1 %v53_v10 }
  0x35   :  { %298 = vmatprep.subr.mxu0 %v431_v0  ;;  %333 = vmatprep.subr.mxu1 %v431_v0 }
  0x36   :  { %299 = vmatpush3.msra.mxu0 %v52_v11  ;;  %334 = vmatpush3.msra.mxu1 %v52_v11 }
  0x37   :  { %300 = vmatprep.subr.mxu0 %v431_v0  ;;  %335 = vmatprep.subr.mxu1 %v431_v0 }
  0x38   :  { %301 = vmatpush3.msra.mxu0 %v51_v12  ;;  %336 = vmatpush3.msra.mxu1 %v51_v12 }
  0x39   :  { %302 = vmatprep.subr.mxu0 %v431_v0  ;;  %337 = vmatprep.subr.mxu1 %v431_v0 }
  0x3a   :  { %303 = vmatpush3.msra.mxu0 %v50_v13  ;;  %338 = vmatpush3.msra.mxu1 %v50_v13 }
  0x3b   :  { %304 = vmatprep.subr.mxu0 %v431_v0  ;;  %339 = vmatprep.subr.mxu1 %v431_v0 }
  0x3c   :  { %305 = vmatpush3.msra.mxu0 %v49_v14  ;;  %340 = vmatpush3.msra.mxu1 %v49_v14 }
  0x3d   :  { %306 = vmatprep.subr.mxu0 %v431_v0  ;;  %341 = vmatprep.subr.mxu1 %v431_v0 }
  0x3e   :  { %307 = vmatpush3.msra.mxu0 %v48_v15  ;;  %342 = vmatpush3.msra.mxu1 %v48_v15 }
  0x3f   :  { %308 = vmatprep.subr.mxu0 %v431_v0  ;;  %343 = vmatprep.subr.mxu1 %v431_v0 }
  0x40   :  { %309 = vmatpush3.msra.mxu0 %v47_v16  ;;  %344 = vmatpush3.msra.mxu1 %v47_v16 }
  0x41   :  { %311 = vmatmul.mubr.f32.vlgmr.msra.gmra.mxu0 %v46_v17 }
 0x101   :  { %v129_v18 = vpop.f32.mrf.mxu0 }
 0x102   :  { %v133_v19 = vsub.f32 %v46_v17, %v129_v18 }
 0x103   :  { %v312_v20 = vpop.f32.mrf.mxu0 }
 0x104   :  { %v134_v21 = vmul.f32 %v133_v19, %v133_v19 }
 0x106   :  { %346 = vmatmul.mubr.f32.vlgmr.msra.gmra.mxu1 %v134_v21 }
 0x1c6   :  { %v201_v22 = vpop.f32.mrf.mxu1 }
 0x1c7   :  { %v202_v23 = vadd.f32 1e-05, %v201_v22 }
 0x1c8   :  { %v347_v24 = vpop.f32.mrf.mxu1 }
 0x1c9   :  { %357 = vrsqrt.f32 %v202_v23 }
 0x1d6   :  { %v358_v26 = vpop.eup %357 }
 0x1d7   :  { %v214_v27 = vmul.f32 %v358_v26, %v242_v25 }
 0x1d9   :  { %v215_v29 = vmul.f32 %v214_v27, %v133_v19 }
 0x1db   :  { %v222_v30 = vadd.f32 %v243_v28, %v215_v29 }
 0x1dd   :  { %223 = vst [vmem:[#allocation7] sm:$0xff] %v222_v30 }
 0x1de   :  { %228 = vsyncadd [#allocation4], 64  ;;  %s433_s6 = smov [#allocation7]  }
 0x1df   :  { %s229_s7 = sshll.u32 %s433_s6, 4  ;;  %s230_s7 = int_to_ptr.vmem [resolvable:$true] %s229_s7 }
 0x1e0   :  { %s399_s8 = scalar_lea.vmem %s230_s7, 64  ;;  %s403_s9 = scalar_lea.vmem %s230_s7, 128 }
 0x1e1   :  { %p400_p10 = scmp.ne.s32.totalorder %s230_s7, %s399_s8  ;;  %p404_p11 = scmp.lt.s32.totalorder %s230_s7, %s230_s7 }
 0x1e2   :  { %p405_p12 = scmp.lt.s32.totalorder %s403_s9, %s399_s8 }
 0x1e4   :  { %p406_p13 = por %p405_p12, %p404_p11 }
 0x1e6   :  { %p407_p0 = pnand %p406_p13, %p400_p10 }
 0x1e8   :  { %410 = shalt.err (!%p407_p0)
}
 0x1e9   :  { %235 = dma.vmem_to_hbm [thread:$0]  %s230_s7, 64, %s518_s4, [#allocation4], %s426_s19, %s426_s19, %s427_s20  }
 0x1ea   :  { %423 = dma.done.wait [#allocation4], 128  }
 0x1eb   :  { %424 = vsyncadd [#allocation4], 4294967168 }
 0x1ec   :  { %239 = vsyncpa [#allocation3], 1 }
 0x1ed   :  { %240 = vsyncpa [#allocation6], 1 }
 0x1ee   :  { %241 = vsyncpa [#allocation4], 1 }

</bundles_post_ra>
